<compile_context>
chip_gen: v7x
topology: tpu7x:2x2x1
jax: 0.10.0
libtpu: 0.0.40
codegen_flags: <defaults>
</compile_context>

<pallas_src>
import functools
import math

import jax
import jax.numpy as jnp
from jax.experimental import pallas as pl
from jax.experimental.pallas import tpu as pltpu


# ----------------------------------------------------------------------------
# Kernel
# ----------------------------------------------------------------------------
def actor_critic_kernel(state_ref, eps_ref, w_ref, b_ref, out_ref, *,
                        obs_dim, obs_pad, hpad, ew):
    x = state_ref[...]                                    # (TB, obs_dim)
    eps = eps_ref[...]                                    # (TB, EW); zeros beyond A

    # Static row slices of the packed weight slab (offsets are multiples of 8).
    w1 = w_ref[0:obs_dim, :]                              # (obs_dim, HPAD)
    w2 = w_ref[obs_pad:obs_pad + hpad, :]                 # (HPAD, HPAD)  block-diag
    w3 = w_ref[obs_pad + hpad:obs_pad + 2 * hpad, :]      # (HPAD, HPAD)  fused heads
    s = w_ref[obs_pad + 2 * hpad:obs_pad + 2 * hpad + ew, :]   # (EW, HPAD) noise scatter

    b_all = b_ref[...]                                    # (4, HPAD)
    b1 = b_all[0:1, :]
    b2 = b_all[1:2, :]
    b3 = b_all[2:3, :]          # mean bias | value bias | precomputed logp constant
    lp_onehot = b_all[3:4, :]   # 1.0 at lane A+1, 0 elsewhere (packed constant)

    # Fused actor+critic trunk: lanes 0:FC = actor, FC:2FC = critic, rest = 0.
    h = jnp.maximum(jnp.dot(x, w1, preferred_element_type=jnp.float32) + b1, 0.0)
    h = jnp.maximum(jnp.dot(h, w2, preferred_element_type=jnp.float32) + b2, 0.0)
    # Fused heads: lanes 0:A = action mean, lane A = value, lane A+1 = logp const.
    head = jnp.dot(h, w3, preferred_element_type=jnp.float32) + b3

    # Reparameterised sample: eps @ S puts std*eps exactly in lanes 0:A and
    # zeros elsewhere, so the value / log_prob lanes are untouched.
    eps_scaled = jnp.dot(eps, s, preferred_element_type=jnp.float32)

    # log_prob = -0.5*sum(eps^2) + (const already stored in lane A+1 of b3).
    sq = -0.5 * jnp.sum(eps * eps, axis=-1, keepdims=True)      # (TB, 1)

    # Single lane-dense unmasked 128-wide store.
    out_ref[...] = head + eps_scaled + sq * lp_onehot


# ----------------------------------------------------------------------------
# Wrapper
# ----------------------------------------------------------------------------
def _round_up(x, m):
    return ((x + m - 1) // m) * m


def _pick_batch_tile(batch):
    """Batch tile: multiple of 8, capped at 1024 rows, and (when possible)
    >= 2 grid steps so v7x's two TensorCores both engage; round-up waste is
    bounded to < 8 rows per grid step."""
    bp8 = _round_up(batch, 8)
    if bp8 <= 8:
        return 8                      # tiny batch: one 8-row tile (launch-bound anyway)
    n_steps = max(2, -(-bp8 // 1024))
    return _round_up(-(-bp8 // n_steps), 8)


@jax.jit
def actor_critic_forward(state, eps, wslab, bslab):
    """Returns (value [B,1], action [B,A], log_prob [B,1]) — matches torch forward().
    `eps` is standard-normal noise of shape (B, A); pass zeros for deterministic."""
    B, obs_dim = state.shape
    A = eps.shape[1]
    hpad = wslab.shape[1]
    ew = _round_up(A, 8)
    obs_pad = wslab.shape[0] - 2 * hpad - ew
    f32 = jnp.float32

    TB = _pick_batch_tile(B)
    Bp = _round_up(B, TB)

    state_in = state.astype(f32)
    eps_in = eps.astype(f32)
    # Pad only when strictly necessary (no extra HBM round-trip on the hot path):
    # state never needs lane padding (block last dim == full extent), rows only
    # when B is not a multiple of the tile; eps needs its last dim rounded to 8.
    if Bp != B:
        state_in = jnp.pad(state_in, ((0, Bp - B), (0, 0)))
    if Bp != B or ew != A:
        eps_in = jnp.pad(eps_in, ((0, Bp - B), (0, ew - A)))

    kernel = functools.partial(
        actor_critic_kernel, obs_dim=obs_dim, obs_pad=obs_pad, hpad=hpad, ew=ew)

    out = pl.pallas_call(
        kernel,
        grid=(Bp // TB,),
        in_specs=[
            pl.BlockSpec((TB, obs_dim), lambda i: (i, 0)),   # state tile (no lane pad)
            pl.BlockSpec((TB, ew), lambda i: (i, 0)),        # narrow noise tile
            pl.BlockSpec(wslab.shape, lambda i: (0, 0)),     # weight slab, VMEM-resident
            pl.BlockSpec(bslab.shape, lambda i: (0, 0)),     # bias/one-hot slab
        ],
        out_specs=pl.BlockSpec((TB, hpad), lambda i: (i, 0)),
        out_shape=jax.ShapeDtypeStruct((Bp, hpad), f32),
        compiler_params=pltpu.CompilerParams(
            dimension_semantics=("parallel",),
        ),
    )(state_in, eps_in, wslab, bslab)

    # One narrow slice of the slab, split outside (avoids three full-slab gathers).
    res = out[:B, :A + 2]
    action = res[:, :A]
    value = res[:, A:A + 1]
    log_prob = res[:, A + 1:A + 2]
    return value, action, log_prob


# ----------------------------------------------------------------------------
# Parameter init (mirrors nn.init.kaiming_uniform_(relu), zeros bias) & packing
# ----------------------------------------------------------------------------
def kaiming_uniform(key, fan_in, fan_out):
    # PyTorch kaiming_uniform_(nonlinearity='relu', mode='fan_in'):
    # bound = sqrt(6 / fan_in). Stored as [in, out] (transposed vs. PyTorch).
    bound = math.sqrt(6.0 / fan_in)
    return jax.random.uniform(
        key, (fan_in, fan_out), minval=-bound, maxval=bound, dtype=jnp.float32)


def init_params(key, obs_dim, act_dim, fc_units):
    keys = jax.random.split(key, 6)
    z = lambda n: jnp.zeros((1, n), dtype=jnp.float32)
    return {
        # actor
        "w1a": kaiming_uniform(keys[0], obs_dim, fc_units), "b1a": z(fc_units),
        "w2a": kaiming_uniform(keys[1], fc_units, fc_units), "b2a": z(fc_units),
        "wm": kaiming_uniform(keys[2], fc_units, act_dim), "bm": z(act_dim),
        "log_std": jnp.zeros((1, act_dim), dtype=jnp.float32),
        # critic
        "w1c": kaiming_uniform(keys[3], obs_dim, fc_units), "b1c": z(fc_units),
        "w2c": kaiming_uniform(keys[4], fc_units, fc_units), "b2c": z(fc_units),
        "wv": kaiming_uniform(keys[5], fc_units, 1), "bv": z(1),
    }


def pack_params(params, obs_dim, act_dim, fc_units):
    """Pack the 13 tensors into one weight slab and one (4, HPAD) bias slab.

    NOTE(v7x / large fc_units): with hpad = round_up(2*fc, 128) the f32 slab is
    (obs_pad + 2*hpad + ew) * hpad * 4 bytes; for fc_units >= ~512 store it
    bf16 and raise vmem_limit_bytes to keep it VMEM-resident.
    """
    f32 = jnp.float32
    FC = fc_units
    obs_pad = _round_up(obs_dim, 8)
    ew = _round_up(act_dim, 8)
    hpad = max(128, _round_up(2 * FC, 128), _round_up(act_dim + 2, 128))
    # Pack-time invariants the kernel's lane packing relies on.
    assert 2 * FC <= hpad and act_dim + 2 <= hpad

    # Layer 1: [w1a | w1c]  (zero-padded to (obs_pad, hpad)).
    w1 = jnp.zeros((obs_pad, hpad), f32)
    w1 = w1.at[:obs_dim, :FC].set(params["w1a"])
    w1 = w1.at[:obs_dim, FC:2 * FC].set(params["w1c"])
    # Layer 2: block-diagonal (w2a, w2c).
    w2 = jnp.zeros((hpad, hpad), f32)
    w2 = w2.at[:FC, :FC].set(params["w2a"])
    w2 = w2.at[FC:2 * FC, FC:2 * FC].set(params["w2c"])
    # Heads: actor rows -> mean lanes 0:A, critic rows -> value lane A.
    w3 = jnp.zeros((hpad, hpad), f32)
    w3 = w3.at[:FC, :act_dim].set(params["wm"])
    w3 = w3.at[FC:2 * FC, act_dim:act_dim + 1].set(params["wv"])
    # Noise scatter/scale: eps (B, ew) @ S -> std*eps in lanes 0:A, zero elsewhere.
    std = jnp.exp(params["log_std"][0])                          # (A,)
    s = jnp.zeros((ew, hpad), f32)
    s = s.at[jnp.arange(act_dim), jnp.arange(act_dim)].set(std)

    wslab = jnp.concatenate([w1, w2, w3, s], axis=0)   # (obs_pad + 2*hpad + ew, hpad)

    # log_prob constant precomputed here: -sum(log_std) - A/2*ln(2*pi).
    logp_const = (-jnp.sum(params["log_std"])
                  - 0.5 * act_dim * math.log(2.0 * math.pi))

    # Bias slab rows: [b1 | b2 | b3(+logp const) | one-hot(A+1)].
    b = jnp.zeros((4, hpad), f32)
    b = b.at[0, :FC].set(params["b1a"][0])
    b = b.at[0, FC:2 * FC].set(params["b1c"][0])
    b = b.at[1, :FC].set(params["b2a"][0])
    b = b.at[1, FC:2 * FC].set(params["b2c"][0])
    b = b.at[2, :act_dim].set(params["bm"][0])
    b = b.at[2, act_dim].set(params["bv"][0, 0])
    b = b.at[2, act_dim + 1].set(logp_const)
    b = b.at[3, act_dim + 1].set(1.0)
    return wslab, b


# ----------------------------------------------------------------------------
# Pure-JAX reference (matches torch semantics) for validation
# ----------------------------------------------------------------------------
def reference_forward(state, eps, params):
    hi = jax.lax.Precision.HIGHEST
    relu = lambda v: jnp.maximum(v, 0.0)
    h = relu(jnp.dot(state, params["w1a"], precision=hi) + params["b1a"])
    h = relu(jnp.dot(h, params["w2a"], precision=hi) + params["b2a"])
    mean = jnp.dot(h, params["wm"], precision=hi) + params["bm"]
    c = relu(jnp.dot(state, params["w1c"], precision=hi) + params["b1c"])
    c = relu(jnp.dot(c, params["w2c"], precision=hi) + params["b2c"])
    value = jnp.dot(c, params["wv"], precision=hi) + params["bv"]
    std = jnp.exp(params["log_std"])
    action = mean + std * eps
    lp = (-((action - mean) ** 2) / (2.0 * std * std)
          - params["log_std"] - 0.5 * jnp.log(2.0 * jnp.pi))
    log_prob = jnp.sum(lp, axis=-1, keepdims=True)
    return value, action, log_prob


# ----------------------------------------------------------------------------
# Main
# ----------------------------------------------------------------------------
if __name__ == "__main__":
    OBS, ACT, FC = 16, 4, 32

    root = jax.random.PRNGKey(0)
    k_param, k_data = jax.random.split(root)

    params = init_params(k_param, OBS, ACT, FC)
    wslab, bslab = pack_params(params, OBS, ACT, FC)

    # B=8 exercises the tiny single-tile path; B=40 exercises row padding and
    # the >=2-step "parallel" grid (both v7x TensorCores engaged).
    for B in (8, 40):
        ks, ke = jax.random.split(jax.random.fold_in(k_data, B))
        state = jax.random.normal(ks, (B, OBS), dtype=jnp.float32)
        # Standard-normal noise for the reparameterised sample; zeros give the
        # deterministic=True path (action = distribution.mean).
        eps = jax.random.normal(ke, (B, ACT), dtype=jnp.float32)

        value, action, log_prob = actor_critic_forward(state, eps, wslab, bslab)
        jax.block_until_ready((value, action, log_prob))

        assert value.shape == (B, 1)
        assert action.shape == (B, ACT)
        assert log_prob.shape == (B, 1)

        v_ref, a_ref, lp_ref = reference_forward(state, eps, params)
        assert jnp.allclose(value, v_ref, atol=1e-3, rtol=1e-3)
        assert jnp.allclose(action, a_ref, atol=1e-3, rtol=1e-3)
        assert jnp.allclose(log_prob, lp_ref, atol=1e-3, rtol=1e-3)

    print("KERNEL_OK")
</pallas_src>

<mosaic_0001>
module attributes {stable_mosaic.version = 11 : i64} {
  func.func @actor_critic_kernel(%arg0: i32, %arg1: memref<8x16xf32, #tpu.memory_space<vmem>>, %arg2: memref<8x8xf32, #tpu.memory_space<vmem>>, %arg3: memref<280x128xf32, #tpu.memory_space<vmem>>, %arg4: memref<4x128xf32, #tpu.memory_space<vmem>>, %arg5: memref<8x128xf32, #tpu.memory_space<vmem>>) attributes {dimension_semantics = [#tpu.dimension_semantics<parallel>], iteration_bounds = array<i64: 1>, scalar_prefetch = 0 : i64, scratch_operands = 0 : i64, tpu.core_type = #tpu.core_type<tc>, window_params = [{transform_indices = @transform_0, window_bounds = array<i64: 8, 16>}, {transform_indices = @transform_1, window_bounds = array<i64: 8, 8>}, {pipeline_mode = #tpu.pipeline_mode<synchronous>, transform_indices = @transform_2, window_bounds = array<i64: 280, 128>}, {pipeline_mode = #tpu.pipeline_mode<synchronous>, transform_indices = @transform_3, window_bounds = array<i64: 4, 128>}, {transform_indices = @transform_4, window_bounds = array<i64: 8, 128>}]} {
    %c0 = arith.constant 0 : index
    %c0_0 = arith.constant 0 : index
    %0 = vector.load %arg1[%c0, %c0_0] : memref<8x16xf32, #tpu.memory_space<vmem>>, vector<8x16xf32>
    %c0_1 = arith.constant 0 : index
    %c0_2 = arith.constant 0 : index
    %1 = vector.load %arg2[%c0_1, %c0_2] : memref<8x8xf32, #tpu.memory_space<vmem>>, vector<8x8xf32>
    %c0_3 = arith.constant 0 : index
    %c0_4 = arith.constant 0 : index
    %2 = vector.load %arg3[%c0_3, %c0_4] : memref<280x128xf32, #tpu.memory_space<vmem>>, vector<16x128xf32>
    %c16 = arith.constant 16 : index
    %c0_5 = arith.constant 0 : index
    %3 = vector.load %arg3[%c16, %c0_5] : memref<280x128xf32, #tpu.memory_space<vmem>>, vector<128x128xf32>
    %c144 = arith.constant 144 : index
    %c0_6 = arith.constant 0 : index
    %4 = vector.load %arg3[%c144, %c0_6] : memref<280x128xf32, #tpu.memory_space<vmem>>, vector<128x128xf32>
    %c272 = arith.constant 272 : index
    %c0_7 = arith.constant 0 : index
    %5 = vector.load %arg3[%c272, %c0_7] : memref<280x128xf32, #tpu.memory_space<vmem>>, vector<8x128xf32>
    %c0_8 = arith.constant 0 : index
    %c0_9 = arith.constant 0 : index
    %6 = vector.load %arg4[%c0_8, %c0_9] : memref<4x128xf32, #tpu.memory_space<vmem>>, vector<4x128xf32>
    %7 = vector.extract_strided_slice %6 {offsets = [0, 0], sizes = [1, 128], strides = [1, 1]} : vector<4x128xf32> to vector<1x128xf32>
    %8 = vector.extract_strided_slice %6 {offsets = [1, 0], sizes = [1, 128], strides = [1, 1]} : vector<4x128xf32> to vector<1x128xf32>
    %9 = vector.extract_strided_slice %6 {offsets = [2, 0], sizes = [1, 128], strides = [1, 1]} : vector<4x128xf32> to vector<1x128xf32>
    %10 = vector.extract_strided_slice %6 {offsets = [3, 0], sizes = [1, 128], strides = [1, 1]} : vector<4x128xf32> to vector<1x128xf32>
    %cst = arith.constant dense<0.000000e+00> : vector<8x128xf32>
    %11 = tpu.matmul %0, %2, %cst {dimension_numbers = #tpu.dot_dimension_numbers<[1], [0], [0], [1], [0, 0, 1, 1], [], []>} : vector<8x16xf32>, vector<16x128xf32>, vector<8x128xf32> -> vector<8x128xf32>
    %12 = vector.broadcast %7 : vector<1x128xf32> to vector<8x128xf32>
    %13 = arith.addf %11, %12 : vector<8x128xf32>
    %cst_10 = arith.constant 0.000000e+00 : f32
    %14 = vector.broadcast %cst_10 : f32 to vector<8x128xf32>
    %15 = arith.maximumf %13, %14 : vector<8x128xf32>
    %cst_11 = arith.constant dense<0.000000e+00> : vector<8x128xf32>
    %16 = tpu.matmul %15, %3, %cst_11 {dimension_numbers = #tpu.dot_dimension_numbers<[1], [0], [0], [1], [0, 0, 1, 1], [], []>} : vector<8x128xf32>, vector<128x128xf32>, vector<8x128xf32> -> vector<8x128xf32>
    %17 = vector.broadcast %8 : vector<1x128xf32> to vector<8x128xf32>
    %18 = arith.addf %16, %17 : vector<8x128xf32>
    %cst_12 = arith.constant 0.000000e+00 : f32
    %19 = vector.broadcast %cst_12 : f32 to vector<8x128xf32>
    %20 = arith.maximumf %18, %19 : vector<8x128xf32>
    %cst_13 = arith.constant dense<0.000000e+00> : vector<8x128xf32>
    %21 = tpu.matmul %20, %4, %cst_13 {dimension_numbers = #tpu.dot_dimension_numbers<[1], [0], [0], [1], [0, 0, 1, 1], [], []>} : vector<8x128xf32>, vector<128x128xf32>, vector<8x128xf32> -> vector<8x128xf32>
    %22 = vector.broadcast %9 : vector<1x128xf32> to vector<8x128xf32>
    %23 = arith.addf %21, %22 : vector<8x128xf32>
    %cst_14 = arith.constant dense<0.000000e+00> : vector<8x128xf32>
    %24 = tpu.matmul %1, %5, %cst_14 {dimension_numbers = #tpu.dot_dimension_numbers<[1], [0], [0], [1], [0, 0, 1, 1], [], []>} : vector<8x8xf32>, vector<8x128xf32>, vector<8x128xf32> -> vector<8x128xf32>
    %25 = arith.mulf %1, %1 : vector<8x8xf32>
    %cst_15 = arith.constant dense<0.000000e+00> : vector<8xf32>
    %26 = vector.multi_reduction <add>, %25, %cst_15 [1] : vector<8x8xf32> to vector<8xf32>
    %27 = vector.shape_cast %26 : vector<8xf32> to vector<8x1xf32>
    %cst_16 = arith.constant -5.000000e-01 : f32
    %28 = vector.broadcast %cst_16 : f32 to vector<8x1xf32>
    %29 = arith.mulf %28, %27 : vector<8x1xf32>
    %30 = arith.addf %23, %24 : vector<8x128xf32>
    %31 = vector.broadcast %29 : vector<8x1xf32> to vector<8x128xf32>
    %32 = vector.broadcast %10 : vector<1x128xf32> to vector<8x128xf32>
    %33 = arith.mulf %31, %32 : vector<8x128xf32>
    %34 = arith.addf %30, %33 : vector<8x128xf32>
    %c0_17 = arith.constant 0 : index
    %c0_18 = arith.constant 0 : index
    %35 = vector.load %arg5[%c0_17, %c0_18] : memref<8x128xf32, #tpu.memory_space<vmem>>, vector<8x128xf32>
    tpu.vector_store %arg5[%c0_17, %c0_18], %34 {strides = array<i32>} : memref<8x128xf32, #tpu.memory_space<vmem>>, vector<8x128xf32>,
    return
  }
  func.func @transform_0(%arg0: i32) -> (i32, i32) {
    %c0_i32 = arith.constant 0 : i32
    %c0_i32_0 = arith.constant 0 : i32
    return %arg0, %c0_i32 : i32, i32
  }
  func.func @transform_1(%arg0: i32) -> (i32, i32) {
    %c0_i32 = arith.constant 0 : i32
    %c0_i32_0 = arith.constant 0 : i32
    return %arg0, %c0_i32 : i32, i32
  }
  func.func @transform_2(%arg0: i32) -> (i32, i32) {
    %c0_i32 = arith.constant 0 : i32
    %c0_i32_0 = arith.constant 0 : i32
    %c0_i32_1 = arith.constant 0 : i32
    return %c0_i32, %c0_i32_0 : i32, i32
  }
  func.func @transform_3(%arg0: i32) -> (i32, i32) {
    %c0_i32 = arith.constant 0 : i32
    %c0_i32_0 = arith.constant 0 : i32
    %c0_i32_1 = arith.constant 0 : i32
    return %c0_i32, %c0_i32_0 : i32, i32
  }
  func.func @transform_4(%arg0: i32) -> (i32, i32) {
    %c0_i32 = arith.constant 0 : i32
    %c0_i32_0 = arith.constant 0 : i32
    return %arg0, %c0_i32 : i32, i32
  }
}

</mosaic_0001>

<bundles_post_ra>
// kernel: actor_critic_forward.1
= control target key start
LH: loop header
LB: loop body
LE: loop exit
PB: predicated region body
PF: predicated region fallthrough
CT: control target
= control target key end

     0   :  { %9 = vsyncpa [#allocation3], 0  ;;  %s593_s15 = smov [#allocation2]   ;;  %s674_s0 = inlined_call_operand.vmem [shape: f32[8,16], index: 0, kind: input, shape index: {}]   ;;  %s675_s1 = inlined_call_operand.vmem [shape: f32[8,8], index: 1, kind: input, shape index: {}]   ;;  %s676_s2 = inlined_call_operand.hbm [shape: f32[280,128], index: 2, kind: input, shape index: {}]   ;;  %s677_s3 = inlined_call_operand.vmem [shape: f32[4,128], index: 3, kind: input, shape index: {}]   ;;  %s678_s4 = inlined_call_operand.vmem [shape: f32[8,128], index: 4, kind: output, shape index: {}]  }
   0x1   :  { %s19_s16 = sshll.u32 %s593_s15, 4  ;;  %s569_s19 = scalar_lea.hbm %s676_s2, 4480  ;;  %s20_s16 = int_to_ptr.vmem [resolvable:$true] %s19_s16 }
   0x2   :  { %p570_p0 = scmp.ne.s32.totalorder %s676_s2, %s569_s19  ;;  %p573_p1 = scmp.lt.u32.totalorder %s569_s19, %s676_s2 }
   0x4   :  { %p575_p2 = pnand %p573_p1, %p570_p0 }
   0x6   :  { %578 = shalt.err (!%p575_p2)
}
   0x7   :  { %s579_s24 = scalar_lea.vmem %s20_s16, 4480  ;;  %p584_p4 = scmp.lt.s32.totalorder %s20_s16, %s20_s16 }
   0x8   :  { %p580_p3 = scmp.ne.s32.totalorder %s20_s16, %s579_s24  ;;  %p585_p5 = scmp.lt.s32.totalorder %s579_s24, %s579_s24 }
   0xa   :  { %p586_p6 = por %p585_p5, %p584_p4 }
   0xc   :  { %p587_p7 = pnand %p586_p6, %p580_p3 }
   0xe   :  { %590 = shalt.err (!%p587_p7)
}
   0xf   :  { %s594_s25 = smov 128   ;;  %s595_s26 = smov 8  }
  0x10   :  { %25 = dma.hbm_to_vmem [thread:$0]  %s676_s2, 4480, %s20_s16, [#allocation3], %s594_s25, %s594_s25, %s595_s26  }
  0x11   :  { %591 = dma.done.wait [#allocation3], 4480  }
  0x12   :  { %592 = vsyncadd [#allocation3], 4294962816  ;;  %v596_v0 = vmov 0.0|0.0   ;;  %vm597_vm0 = vmmov 0   ;;  %v598_v1 = vmov 0.0   ;;  %v33_v2 = vld [vmem:[#allocation2] sm:$0xff]  ;;  %v69_v51 = vlaneseq }
  0x13   :  { %512 = vmatprep.subr.bf16.mxu0 %v596_v0  ;;  %434 = vmatprep.mubr.msk.f32.mxu0 %vm597_vm0, %v598_v1  ;;  %v34_v3 = vld [vmem:[#allocation2 + $0x8] sm:$0xff]  ;;  %v35_v5 = vld [vmem:[#allocation2 + $0x10] sm:$0xff]  ;;  %v36_v6 = vld [vmem:[#allocation2 + $0x18] sm:$0xff]  ;;  %vm73_vm1 = vcmask 130048   ;;  %vm297_vm2 = vcmask 64512  }
  0x14   :  { %515 = vmatprep.subr.bf16.mxu1 %v596_v0  ;;  %469 = vmatprep.mubr.msk.f32.mxu1 %vm597_vm0, %v598_v1  ;;  %v513_v4 = vpack.c.bf16 %v34_v3, %v33_v2  ;;  %v37_v7 = vld [vmem:[#allocation2 + $0x20] sm:$0xff]  ;;  %v516_v8 = vpack.c.bf16 %v36_v6, %v35_v5  ;;  %v38_v9 = vld [vmem:[#allocation2 + $0x28] sm:$0xff]  ;;  %v39_v12 = vld [vmem:[#allocation2 + $0x30] sm:$0xff]  ;;  %v70_v52 = vshrl.u32 %v69_v51, 7 }
  0x15   :  { %v31_v10 = vld [vmem:[%s674_s0] sm:$0xff]  ;;  %v519_v11 = vpack.c.bf16 %v38_v9, %v37_v7  ;;  %v40_v13 = vld [vmem:[#allocation2 + $0x38] sm:$0xff]  ;;  %v42_v16 = vld [vmem:[#allocation2 + $0x48] sm:$0xff] }
  0x16   :  { %514 = vmatpush3.bf16.msra.mxu0 %v513_v4  ;;  %517 = vmatpush3.bf16.msra.mxu1 %v516_v8  ;;  %v522_v14 = vpack.c.bf16 %v40_v13, %v39_v12  ;;  %v41_v15 = vld [vmem:[#allocation2 + $0x40] sm:$0xff]  ;;  %v43_v18 = vld [vmem:[#allocation2 + $0x50] sm:$0xff]  ;;  %v44_v19 = vld [vmem:[#allocation2 + $0x58] sm:$0xff]  ;;  %v71_v53 = vsub.s32 0, %v70_v52  ;;  %v150_v4 = vsub.s32 1, %v70_v52  ;;  %v379_v12 = vsub.s32 3, %v70_v52 }
  0x17   :  { %539 = vmatprep.subr.bf16.mxu0 %v596_v0  ;;  %518 = vmatprep.subr.bf16.mxu1 %v596_v0  ;;  %v525_v17 = vpack.c.bf16 %v42_v16, %v41_v15  ;;  %v528_v20 = vpack.c.bf16 %v44_v19, %v43_v18  ;;  %v45_v21 = vld [vmem:[#allocation2 + $0x60] sm:$0xff]  ;;  %v46_v22 = vld [vmem:[#allocation2 + $0x68] sm:$0xff]  ;;  %v47_v24 = vld [vmem:[#allocation2 + $0x70] sm:$0xff] }
  0x18   :  { %v531_v23 = vpack.c.bf16 %v46_v22, %v45_v21  ;;  %v48_v25 = vld [vmem:[#allocation2 + $0x78] sm:$0xff]  ;;  %v49_v27 = vld [vmem:[#allocation2 + $0x80] sm:$0xff]  ;;  %v50_v28 = vld [vmem:[#allocation2 + $0x88] sm:$0xff] }
  0x19   :  { %435 = vmatmul.mubr.msk.f32.vlgmr.msra.gmra.mrb[0].mxu0 %vm73_vm1, %v31_v10  ;;  %v534_v26 = vpack.c.bf16 %v48_v25, %v47_v24  ;;  %v537_v29 = vpack.c.bf16 %v50_v28, %v49_v27  ;;  %v51_v30 = vld [vmem:[#allocation2 + $0x90] sm:$0xff]  ;;  %v52_v31 = vld [vmem:[#allocation2 + $0x98] sm:$0xff]  ;;  %v53_v32 = vld [vmem:[#allocation2 + $0xa0] sm:$0xff] }
  0x1a   :  { %504 = vmatprep.mubr.msk.f32.mxu0 %vm597_vm0, %v598_v1  ;;  %520 = vmatpush3.bf16.msra.mxu1 %v519_v11  ;;  %v540_v33 = vpack.c.bf16 %v52_v31, %v51_v30  ;;  %v54_v34 = vld [vmem:[#allocation2 + $0xa8] sm:$0xff]  ;;  %v55_v36 = vld [vmem:[#allocation2 + $0xb0] sm:$0xff]  ;;  %v56_v37 = vld [vmem:[#allocation2 + $0xb8] sm:$0xff]  ;;  %v225_v11 = vsub.s32 2, %v70_v52 }
  0x1b   :  { %521 = vmatprep.subr.bf16.mxu1 %v596_v0  ;;  %v543_v35 = vpack.c.bf16 %v54_v34, %v53_v32  ;;  %v546_v38 = vpack.c.bf16 %v56_v37, %v55_v36  ;;  %v57_v39 = vld [vmem:[#allocation2 + $0xc0] sm:$0xff]  ;;  %v58_v40 = vld [vmem:[#allocation2 + $0xc8] sm:$0xff]  ;;  %v59_v42 = vld [vmem:[#allocation2 + $0xd0] sm:$0xff] }
  0x1c   :  { %541 = vmatpush3.bf16.msra.mxu0 %v540_v33  ;;  %v549_v41 = vpack.c.bf16 %v58_v40, %v57_v39  ;;  %v60_v43 = vld [vmem:[#allocation2 + $0xd8] sm:$0xff]  ;;  %v61_v45 = vld [vmem:[#allocation2 + $0xe0] sm:$0xff]  ;;  %v62_v46 = vld [vmem:[#allocation2 + $0xe8] sm:$0xff] }
  0x1d   :  { %542 = vmatprep.subr.bf16.mxu0 %v596_v0  ;;  %v552_v44 = vpack.c.bf16 %v60_v43, %v59_v42  ;;  %v555_v47 = vpack.c.bf16 %v62_v46, %v61_v45  ;;  %v63_v48 = vld [vmem:[#allocation2 + $0xf0] sm:$0xff]  ;;  %v64_v49 = vld [vmem:[#allocation2 + $0xf8] sm:$0xff]  ;;  %v68_v54 = vld [vmem:[%s677_s3] sm:$0xf] }
  0x1e   :  { %523 = vmatpush3.bf16.msra.mxu1 %v522_v14  ;;  %v558_v50 = vpack.c.bf16 %v64_v49, %v63_v48  ;;  %v72_v55 = vrot.slane %v68_v54, %v71_v53  ;;  %v65_v60 = vld [vmem:[#allocation2 + $0x100] sm:$0xff]  ;;  %v66_v61 = vld [vmem:[#allocation2 + $0x108] sm:$0xff]  ;;  %v67_v63 = vld [vmem:[#allocation2 + $0x110] sm:$0xff]  ;;  %v151_v5 = vrot.slane %v68_v54, %v150_v4  ;;  %v226_v14 = vrot.slane %v68_v54, %v225_v11 }
  0x1f   :  { %524 = vmatprep.subr.bf16.mxu1 %v596_v0  ;;  %v561_v62 = vpack.c.bf16 %v66_v61, %v65_v60  ;;  %v380_v16 = vrot.slane %v68_v54, %v379_v12 }
  0x20   :  { %544 = vmatpush3.bf16.msra.mxu0 %v543_v35 }
  0x21   :  { %545 = vmatprep.subr.bf16.mxu0 %v596_v0 }
  0x22   :  { %526 = vmatpush3.bf16.msra.mxu1 %v525_v17 }
  0x23   :  { %527 = vmatprep.subr.bf16.mxu1 %v596_v0 }
  0x24   :  { %547 = vmatpush3.bf16.msra.mxu0 %v546_v38 }
  0x25   :  { %548 = vmatprep.subr.bf16.mxu0 %v596_v0 }
  0x26   :  { %529 = vmatpush3.bf16.msra.mxu1 %v528_v20 }
  0x27   :  { %530 = vmatprep.subr.bf16.mxu1 %v596_v0 }
  0x28   :  { %550 = vmatpush3.bf16.msra.mxu0 %v549_v41 }
  0x29   :  { %551 = vmatprep.subr.bf16.mxu0 %v596_v0 }
  0x2a   :  { %532 = vmatpush3.bf16.msra.mxu1 %v531_v23 }
  0x2b   :  { %533 = vmatprep.subr.bf16.mxu1 %v596_v0 }
  0x2c   :  { %553 = vmatpush3.bf16.msra.mxu0 %v552_v44 }
  0x2d   :  { %554 = vmatprep.subr.bf16.mxu0 %v596_v0 }
  0x2e   :  { %535 = vmatpush3.bf16.msra.mxu1 %v534_v26 }
  0x2f   :  { %536 = vmatprep.subr.bf16.mxu1 %v596_v0 }
  0x30   :  { %556 = vmatpush3.bf16.msra.mxu0 %v555_v47 }
  0x31   :  { %557 = vmatprep.subr.bf16.mxu0 %v596_v0 }
  0x32   :  { %538 = vmatpush3.bf16.msra.mxu1 %v537_v29 }
  0x33   :  { %507 = vmatprep.subr.mxu1 %v598_v1 }
  0x34   :  { %559 = vmatpush3.bf16.msra.mxu0 %v558_v50 }
  0x35   :  { %560 = vmatprep.subr.bf16.mxu0 %v596_v0  ;;  %v32_v0 = vld [vmem:[%s675_s1] sm:$0xff] }
  0x36   :  { %v371_v2 = vmul.f32 %v32_v0, %v32_v0 }
  0x38   :  { %562 = vmatpush3.bf16.msra.mxu0 %v561_v62  ;;  %v372_v3 = vsel %vm297_vm2, %v371_v2, 0.0 }
  0x39   :  { %373 = vadd.xlane.f32.xlu0 %v372_v3 }
  0xc6   :  { %v374_v13 = vpop.xlane.xlu0 %373 }
  0xc7   :  { %v375_v15 = vmul.f32 -0.5, %v374_v13 }
  0xc9   :  { %v381_v19 = vmul.f32 %v380_v16, %v375_v15 }
  0xec   :  { %v143_v56 = vpop.f32.mrb[0].mxu0 }
  0xed   :  { %v144_v57 = vadd.f32 %v143_v56, %v72_v55  ;;  %v436_v58 = vpop.f32.mrb[1].mxu0 }
  0xef   :  { %v147_v59 = vmax.f32 %v144_v57, 0.0 }
  0xf1   :  { %470 = vmatmul.mubr.f32.vlgmr.msra.gmra.mrb[0].mxu1 %v147_v59 }
  0xf2   :  { %509 = vmatprep.mubr.msk.f32.mxu1 %vm597_vm0, %v598_v1  ;;  %508 = vmatpush3.msra.mxu1 %v67_v63 }
  0xf5   :  { %510 = vmatmul.mubr.msk.f32.vlgmr.msra.gmra.mrb[2].mxu1 %vm297_vm2, %v32_v0 }
 0x1c4   :  { %v218_v6 = vpop.f32.mrb[0].mxu1 }
 0x1c5   :  { %v219_v7 = vadd.f32 %v218_v6, %v151_v5  ;;  %v471_v1 = vpop.f32.mrb[1].mxu1 }
 0x1c7   :  { %v222_v8 = vmax.f32 %v219_v7, 0.0 }
 0x1c8   :  { %v367_v9 = vpop.f32.mrb[2].mxu1 }
 0x1c9   :  { %505 = vmatmul.mubr.f32.vlgmr.msra.gmra.mrb[2].mxu0 %v222_v8  ;;  %v511_v10 = vpop.f32.mrb[3].mxu1 }
 0x29c   :  { %v293_v17 = vpop.f32.mrb[2].mxu0 }
 0x29d   :  { %v294_v18 = vadd.f32 %v293_v17, %v226_v14  ;;  %v506_v20 = vpop.f32.mrb[3].mxu0 }
 0x29f   :  { %v376_v21 = vadd.f32 %v367_v9, %v294_v18 }
 0x2a1   :  { %v382_v22 = vadd.f32 %v381_v19, %v376_v21 }
 0x2a3   :  { %383 = vst [vmem:[%s678_s4] sm:$0xff] %v382_v22 }
 0x2a4   :  { %388 = vsyncpa [#allocation3], 1 }

</bundles_post_ra>
